<compile_context>
chip_gen: v7x
topology: tpu7x:2x2x1
jax: 0.10.0
libtpu: 0.0.40
codegen_flags: <defaults>
</compile_context>

<pallas_src>
import functools

import jax
import jax.numpy as jnp
from jax.experimental import pallas as pl
from jax.experimental.pallas import tpu as pltpu


LANE = 128


def _round_up(n, m):
    return ((n + m - 1) // m) * m


def _flatnet_kernel(gen_dim, out_final,
                    x_ref, w1_ref, b1_ref, w2_ref, b2_ref, wh_ref, bh_ref,
                    out_ref):
    # x tile arrives f32; cast to bf16 in-kernel (cheap VPU op, hidden under the
    # output DMA) so the wrapper never writes a second copy of x to HBM.
    x = x_ref[...].astype(jnp.bfloat16)

    # backbone: Linear -> LeakyReLU -> Linear -> LeakyReLU (slope 0.01)
    h1 = jnp.dot(x, w1_ref[...], preferred_element_type=jnp.float32) + b1_ref[...]
    h1 = jnp.maximum(h1, 0.01 * h1)          # LeakyReLU, single VPU op

    h2 = jnp.dot(h1.astype(jnp.bfloat16), w2_ref[...],
                 preferred_element_type=jnp.float32) + b2_ref[...]
    h2 = jnp.maximum(h2, 0.01 * h2)

    # fused heads: columns [0:out_final) = action, column out_final = value,
    # remaining lanes are exact zero padding.
    y = jnp.dot(h2.astype(jnp.bfloat16), wh_ref[...],
                preferred_element_type=jnp.float32) + bh_ref[...]

    # softplus only on the std columns (gen_dim <= c < out_final). Mask built at
    # (1, head_pad) and broadcast, so no [tb, 128] int32/bool temporaries.
    col = jax.lax.broadcasted_iota(jnp.int32, (1, y.shape[1]), 1)
    std_mask = (col >= gen_dim) & (col < out_final)
    sp = jnp.maximum(y, 0.0) + jnp.log1p(jnp.exp(-jnp.abs(y)))   # stable softplus
    packed = jnp.where(std_mask, sp, y)

    # store only the useful columns [mean | std | value]; masked vst, ~14x less
    # HBM writeback than the full 128-lane f32 slab.
    out_ref[...] = packed[:, :out_final + 1]


def _flatnet_forward_impl(x, params, gen_dim, out_final, tb):
    B, obs_dim = x.shape
    n_out = out_final + 1

    bp = _round_up(B, tb)
    if bp != B:
        # batch-axis zero-pad only (fused under jit); no dtype cast here.
        x = jnp.pad(x, ((0, bp - B), (0, 0)))

    grid = (bp // tb,)

    def resident(p):  # weights/biases stay in VMEM across the batch loop
        return pl.BlockSpec(p.shape, lambda i: (0, 0))

    hid1_p = params["w1"].shape[1]
    embed_p = params["w2"].shape[1]
    head_p = params["wh"].shape[1]
    flops = 2 * bp * (obs_dim * hid1_p + hid1_p * embed_p + embed_p * head_p)
    bytes_accessed = (bp * obs_dim * 4 + bp * n_out * 4
                      + sum(int(v.size) * v.dtype.itemsize for v in params.values()))

    out = pl.pallas_call(
        functools.partial(_flatnet_kernel, gen_dim, out_final),
        out_shape=jax.ShapeDtypeStruct((bp, n_out), jnp.float32),
        grid_spec=pltpu.PrefetchScalarGridSpec(
            num_scalar_prefetch=0,
            grid=grid,
            in_specs=[
                pl.BlockSpec((tb, obs_dim), lambda i: (i, 0)),   # streamed x tile (f32)
                resident(params["w1"]), resident(params["b1"]),
                resident(params["w2"]), resident(params["b2"]),
                resident(params["wh"]), resident(params["bh"]),
            ],
            out_specs=pl.BlockSpec((tb, n_out), lambda i: (i, 0)),
        ),
        compiler_params=pltpu.CompilerParams(
            dimension_semantics=("parallel",)),   # megacore sharding on v7x
        cost_estimate=pl.CostEstimate(
            flops=flops, transcendentals=bp * head_p,
            bytes_accessed=bytes_accessed),
    )(x, params["w1"], params["b1"], params["w2"], params["b2"],
      params["wh"], params["bh"])

    out = out[:B]
    action_mean = out[:, :gen_dim]
    action_std = out[:, gen_dim:out_final]
    value = out[:, out_final:out_final + 1]
    return action_mean, action_std, value


@functools.partial(jax.jit, static_argnames=("gen_dim", "out_final", "tb"))
def _flatnet_forward_jit(x, params, gen_dim, out_final, tb):
    return _flatnet_forward_impl(x, params, gen_dim, out_final, tb)


def flatnet_forward(x, params, gen_dim, out_final, tb=None):
    """x: [B, obs_dim] float32. Returns (action_mean, action_std, value).

    bf16 weights / f32 MXU accumulation (matches flatnet_reference below; a
    small intentional precision deviation from the all-f32 PyTorch module).
    """
    B = x.shape[0]
    if tb is None:
        tb = min(2048, _round_up(B, 16))
    return _flatnet_forward_jit(x, params, gen_dim, out_final, tb)


def init_params(key, obs_dim, embed_dim, gen_dim, out_dim):
    """Synthetic init mirroring FlatNet parameter shapes, padded + head-fused."""
    ks = jax.random.split(key, 8)
    hid1 = embed_dim * 2
    out_final = out_dim * gen_dim

    def linear(kw, kb, fan_in, fan_out, scale=None):
        w = jax.random.normal(kw, (fan_in, fan_out), jnp.float32)
        if scale is None:
            w = w * (1.0 / jnp.sqrt(fan_in))
        else:  # normc_initializer(scale)
            w = scale * w / jnp.sqrt(jnp.sum(w * w, axis=0, keepdims=True))
        b = 0.01 * jax.random.normal(kb, (1, fan_out), jnp.float32)
        return w, b

    w1, b1 = linear(ks[0], ks[1], obs_dim, hid1)
    w2, b2 = linear(ks[2], ks[3], hid1, embed_dim)
    wf, bf = linear(ks[4], ks[5], embed_dim, out_final, scale=0.001)
    wv, bv = linear(ks[6], ks[7], embed_dim, 1, scale=0.001)

    # fuse actor + critic heads into one matmul
    wh = jnp.concatenate([wf, wv], axis=1)   # [embed, out_final + 1]
    bh = jnp.concatenate([bf, bv], axis=1)

    # zero-pad feature dims to full lane width (exact: padded cols/rows contribute 0)
    hid1_p = _round_up(hid1, LANE)
    embed_p = _round_up(embed_dim, LANE)
    head_p = _round_up(out_final + 1, LANE)

    def pad2(a, r, c):
        return jnp.pad(a, ((0, r - a.shape[0]), (0, c - a.shape[1])))

    params = dict(
        w1=pad2(w1, obs_dim, hid1_p).astype(jnp.bfloat16),
        b1=pad2(b1, 1, hid1_p),                                   # f32
        w2=pad2(w2, hid1_p, embed_p).astype(jnp.bfloat16),
        b2=pad2(b2, 1, embed_p),                                  # f32
        wh=pad2(wh, embed_p, head_p).astype(jnp.bfloat16),
        bh=pad2(bh, 1, head_p),                                   # f32
    )
    return params, out_final


def flatnet_reference(x, p, gen_dim, out_final):
    """Pure-JAX reference using the same bf16-weights / f32-accumulate recipe."""
    xb = x.astype(jnp.bfloat16)
    h1 = jnp.dot(xb, p["w1"], preferred_element_type=jnp.float32) + p["b1"]
    h1 = jnp.where(h1 > 0, h1, 0.01 * h1)
    h2 = jnp.dot(h1.astype(jnp.bfloat16), p["w2"],
                 preferred_element_type=jnp.float32) + p["b2"]
    h2 = jnp.where(h2 > 0, h2, 0.01 * h2)
    y = jnp.dot(h2.astype(jnp.bfloat16), p["wh"],
                preferred_element_type=jnp.float32) + p["bh"]
    return (y[:, :gen_dim],
            jax.nn.softplus(y[:, gen_dim:out_final]),
            y[:, out_final:out_final + 1])


if __name__ == "__main__":
    # Small shapes consistent with FlatNet.forward:
    #   obs_dim=32 flat features, embed_dim=32, gen_dim=4 redispatch dims, out_dim=2.
    B, OBS_DIM, EMBED_DIM, GEN_DIM, OUT_DIM = 8, 32, 32, 4, 2

    key = jax.random.PRNGKey(0)
    kx, kp = jax.random.split(key)
    x = jax.random.normal(kx, (B, OBS_DIM), jnp.float32)
    params, OUT_FINAL = init_params(kp, OBS_DIM, EMBED_DIM, GEN_DIM, OUT_DIM)

    mean, std, value = flatnet_forward(x, params, GEN_DIM, OUT_FINAL)
    jax.block_until_ready((mean, std, value))

    # sanity check against pure-JAX reference (same bf16/f32 recipe)
    ref_mean, ref_std, ref_val = flatnet_reference(x, params, GEN_DIM, OUT_FINAL)
    assert mean.shape == (B, GEN_DIM)
    assert std.shape == (B, OUT_FINAL - GEN_DIM)
    assert value.shape == (B, 1)
    assert jnp.allclose(mean, ref_mean, atol=1e-3, rtol=1e-3)
    assert jnp.allclose(std, ref_std, atol=1e-3, rtol=1e-3)
    assert jnp.allclose(value, ref_val, atol=1e-3, rtol=1e-3)

    print("KERNEL_OK")
</pallas_src>

<mosaic_0001>
module attributes {stable_mosaic.version = 11 : i64} {
  func.func @_flatnet_kernel(%arg0: i32, %arg1: memref<16x32xf32, #tpu.memory_space<vmem>>, %arg2: memref<32x128xbf16, #tpu.memory_space<vmem>>, %arg3: memref<1x128xf32, #tpu.memory_space<vmem>>, %arg4: memref<128x128xbf16, #tpu.memory_space<vmem>>, %arg5: memref<1x128xf32, #tpu.memory_space<vmem>>, %arg6: memref<128x128xbf16, #tpu.memory_space<vmem>>, %arg7: memref<1x128xf32, #tpu.memory_space<vmem>>, %arg8: memref<16x9xf32, #tpu.memory_space<vmem>>) attributes {dimension_semantics = [#tpu.dimension_semantics<parallel>], iteration_bounds = array<i64: 1>, scalar_prefetch = 0 : i64, scratch_operands = 0 : i64, tpu.core_type = #tpu.core_type<tc>, window_params = [{transform_indices = @transform_0, window_bounds = array<i64: 16, 32>}, {pipeline_mode = #tpu.pipeline_mode<synchronous>, transform_indices = @transform_1, window_bounds = array<i64: 32, 128>}, {pipeline_mode = #tpu.pipeline_mode<synchronous>, transform_indices = @transform_2, window_bounds = array<i64: 1, 128>}, {pipeline_mode = #tpu.pipeline_mode<synchronous>, transform_indices = @transform_3, window_bounds = array<i64: 128, 128>}, {pipeline_mode = #tpu.pipeline_mode<synchronous>, transform_indices = @transform_4, window_bounds = array<i64: 1, 128>}, {pipeline_mode = #tpu.pipeline_mode<synchronous>, transform_indices = @transform_5, window_bounds = array<i64: 128, 128>}, {pipeline_mode = #tpu.pipeline_mode<synchronous>, transform_indices = @transform_6, window_bounds = array<i64: 1, 128>}, {transform_indices = @transform_7, window_bounds = array<i64: 16, 9>}]} {
    %c0 = arith.constant 0 : index
    %c0_0 = arith.constant 0 : index
    %0 = vector.load %arg1[%c0, %c0_0] : memref<16x32xf32, #tpu.memory_space<vmem>>, vector<16x32xf32>
    %1 = arith.truncf %0 : vector<16x32xf32> to vector<16x32xbf16>
    %c0_1 = arith.constant 0 : index
    %c0_2 = arith.constant 0 : index
    %2 = vector.load %arg2[%c0_1, %c0_2] : memref<32x128xbf16, #tpu.memory_space<vmem>>, vector<32x128xbf16>
    %cst = arith.constant dense<0.000000e+00> : vector<16x128xf32>
    %3 = tpu.matmul %1, %2, %cst {dimension_numbers = #tpu.dot_dimension_numbers<[1], [0], [0], [1], [0, 0, 1, 1], [], []>} : vector<16x32xbf16>, vector<32x128xbf16>, vector<16x128xf32> -> vector<16x128xf32>
    %c0_3 = arith.constant 0 : index
    %c0_4 = arith.constant 0 : index
    %4 = vector.load %arg3[%c0_3, %c0_4] : memref<1x128xf32, #tpu.memory_space<vmem>>, vector<1x128xf32>
    %5 = vector.broadcast %4 : vector<1x128xf32> to vector<16x128xf32>
    %6 = arith.addf %3, %5 : vector<16x128xf32>
    %cst_5 = arith.constant 0.00999999977 : f32
    %7 = vector.broadcast %cst_5 : f32 to vector<16x128xf32>
    %8 = arith.mulf %7, %6 : vector<16x128xf32>
    %9 = arith.maximumf %6, %8 : vector<16x128xf32>
    %10 = arith.truncf %9 : vector<16x128xf32> to vector<16x128xbf16>
    %c0_6 = arith.constant 0 : index
    %c0_7 = arith.constant 0 : index
    %11 = vector.load %arg4[%c0_6, %c0_7] : memref<128x128xbf16, #tpu.memory_space<vmem>>, vector<128x128xbf16>
    %cst_8 = arith.constant dense<0.000000e+00> : vector<16x128xf32>
    %12 = tpu.matmul %10, %11, %cst_8 {dimension_numbers = #tpu.dot_dimension_numbers<[1], [0], [0], [1], [0, 0, 1, 1], [], []>} : vector<16x128xbf16>, vector<128x128xbf16>, vector<16x128xf32> -> vector<16x128xf32>
    %c0_9 = arith.constant 0 : index
    %c0_10 = arith.constant 0 : index
    %13 = vector.load %arg5[%c0_9, %c0_10] : memref<1x128xf32, #tpu.memory_space<vmem>>, vector<1x128xf32>
    %14 = vector.broadcast %13 : vector<1x128xf32> to vector<16x128xf32>
    %15 = arith.addf %12, %14 : vector<16x128xf32>
    %cst_11 = arith.constant 0.00999999977 : f32
    %16 = vector.broadcast %cst_11 : f32 to vector<16x128xf32>
    %17 = arith.mulf %16, %15 : vector<16x128xf32>
    %18 = arith.maximumf %15, %17 : vector<16x128xf32>
    %19 = arith.truncf %18 : vector<16x128xf32> to vector<16x128xbf16>
    %c0_12 = arith.constant 0 : index
    %c0_13 = arith.constant 0 : index
    %20 = vector.load %arg6[%c0_12, %c0_13] : memref<128x128xbf16, #tpu.memory_space<vmem>>, vector<128x128xbf16>
    %cst_14 = arith.constant dense<0.000000e+00> : vector<16x128xf32>
    %21 = tpu.matmul %19, %20, %cst_14 {dimension_numbers = #tpu.dot_dimension_numbers<[1], [0], [0], [1], [0, 0, 1, 1], [], []>} : vector<16x128xbf16>, vector<128x128xbf16>, vector<16x128xf32> -> vector<16x128xf32>
    %c0_15 = arith.constant 0 : index
    %c0_16 = arith.constant 0 : index
    %22 = vector.load %arg7[%c0_15, %c0_16] : memref<1x128xf32, #tpu.memory_space<vmem>>, vector<1x128xf32>
    %23 = vector.broadcast %22 : vector<1x128xf32> to vector<16x128xf32>
    %24 = arith.addf %21, %23 : vector<16x128xf32>
    %25 = tpu.iota {dimensions = array<i32: 1>} : vector<1x128xi32>
    %c4_i32 = arith.constant 4 : i32
    %26 = vector.broadcast %c4_i32 : i32 to vector<1x128xi32>
    %27 = arith.cmpi sge, %25, %26 : vector<1x128xi32>
    %c8_i32 = arith.constant 8 : i32
    %28 = vector.broadcast %c8_i32 : i32 to vector<1x128xi32>
    %29 = arith.cmpi slt, %25, %28 : vector<1x128xi32>
    %30 = arith.andi %27, %29 : vector<1x128xi1>
    %cst_17 = arith.constant 0.000000e+00 : f32
    %31 = vector.broadcast %cst_17 : f32 to vector<16x128xf32>
    %32 = arith.maximumf %24, %31 : vector<16x128xf32>
    %33 = math.absf %24 : vector<16x128xf32>
    %cst_18 = arith.constant 0.000000e+00 : f32
    %34 = vector.broadcast %cst_18 : f32 to vector<16x128xf32>
    %35 = arith.subf %34, %33 : vector<16x128xf32>
    %36 = math.exp %35 : vector<16x128xf32>
    %37 = math.log1p %36 : vector<16x128xf32>
    %38 = arith.addf %32, %37 : vector<16x128xf32>
    %39 = vector.shape_cast %30 : vector<1x128xi1> to vector<1x128xi1>
    %40 = vector.broadcast %39 : vector<1x128xi1> to vector<16x128xi1>
    %41 = arith.select %40, %38, %24 : vector<16x128xi1>, vector<16x128xf32>
    %42 = vector.extract_strided_slice %41 {offsets = [0, 0], sizes = [16, 9], strides = [1, 1]} : vector<16x128xf32> to vector<16x9xf32>
    %c0_19 = arith.constant 0 : index
    %c0_20 = arith.constant 0 : index
    %43 = vector.load %arg8[%c0_19, %c0_20] : memref<16x9xf32, #tpu.memory_space<vmem>>, vector<16x9xf32>
    tpu.vector_store %arg8[%c0_19, %c0_20], %42 {strides = array<i32>} : memref<16x9xf32, #tpu.memory_space<vmem>>, vector<16x9xf32>,
    return
  }
  func.func @transform_0(%arg0: i32) -> (i32, i32) {
    %c0_i32 = arith.constant 0 : i32
    %c0_i32_0 = arith.constant 0 : i32
    return %arg0, %c0_i32 : i32, i32
  }
  func.func @transform_1(%arg0: i32) -> (i32, i32) {
    %c0_i32 = arith.constant 0 : i32
    %c0_i32_0 = arith.constant 0 : i32
    %c0_i32_1 = arith.constant 0 : i32
    return %c0_i32, %c0_i32_0 : i32, i32
  }
  func.func @transform_2(%arg0: i32) -> (i32, i32) {
    %c0_i32 = arith.constant 0 : i32
    %c0_i32_0 = arith.constant 0 : i32
    %c0_i32_1 = arith.constant 0 : i32
    return %c0_i32, %c0_i32_0 : i32, i32
  }
  func.func @transform_3(%arg0: i32) -> (i32, i32) {
    %c0_i32 = arith.constant 0 : i32
    %c0_i32_0 = arith.constant 0 : i32
    %c0_i32_1 = arith.constant 0 : i32
    return %c0_i32, %c0_i32_0 : i32, i32
  }
  func.func @transform_4(%arg0: i32) -> (i32, i32) {
    %c0_i32 = arith.constant 0 : i32
    %c0_i32_0 = arith.constant 0 : i32
    %c0_i32_1 = arith.constant 0 : i32
    return %c0_i32, %c0_i32_0 : i32, i32
  }
  func.func @transform_5(%arg0: i32) -> (i32, i32) {
    %c0_i32 = arith.constant 0 : i32
    %c0_i32_0 = arith.constant 0 : i32
    %c0_i32_1 = arith.constant 0 : i32
    return %c0_i32, %c0_i32_0 : i32, i32
  }
  func.func @transform_6(%arg0: i32) -> (i32, i32) {
    %c0_i32 = arith.constant 0 : i32
    %c0_i32_0 = arith.constant 0 : i32
    %c0_i32_1 = arith.constant 0 : i32
    return %c0_i32, %c0_i32_0 : i32, i32
  }
  func.func @transform_7(%arg0: i32) -> (i32, i32) {
    %c0_i32 = arith.constant 0 : i32
    %c0_i32_0 = arith.constant 0 : i32
    return %arg0, %c0_i32 : i32, i32
  }
}

</mosaic_0001>

<bundles_post_ra>
// kernel: _flatnet_forward_jit.1
= control target key start
LH: loop header
LB: loop body
LE: loop exit
PB: predicated region body
PF: predicated region fallthrough
CT: control target
= control target key end

     0   :  { %12 = vsyncpa [#allocation3], 0  ;;  %s700_s0 = inlined_call_operand.vmem [shape: f32[16,32], index: 0, kind: input, shape index: {}]   ;;  %s701_s1 = inlined_call_operand.vmem [shape: bf16[32,128], index: 1, kind: input, shape index: {}]   ;;  %s702_s2 = inlined_call_operand.vmem [shape: f32[1,128], index: 2, kind: input, shape index: {}]   ;;  %s703_s3 = inlined_call_operand.hbm [shape: bf16[128,128], index: 3, kind: input, shape index: {}]   ;;  %s704_s4 = inlined_call_operand.vmem [shape: f32[1,128], index: 4, kind: input, shape index: {}]   ;;  %s705_s5 = inlined_call_operand.hbm [shape: bf16[128,128], index: 5, kind: input, shape index: {}]   ;;  %s706_s6 = inlined_call_operand.vmem [shape: f32[1,128], index: 6, kind: input, shape index: {}]   ;;  %s707_s7 = inlined_call_operand.vmem [shape: f32[16,9], index: 7, kind: output, shape index: {}]  }
   0x1   :  { %13 = vsyncpa [#allocation5], 0  ;;  %s579_s24 = smov [#allocation2]   ;;  %s531_s28 = scalar_lea.hbm %s703_s3, 1024 }
   0x2   :  { %s25_s25 = sshll.u32 %s579_s24, 4  ;;  %p532_p0 = scmp.ne.s32.totalorder %s703_s3, %s531_s28  ;;  %s26_s25 = int_to_ptr.vmem [resolvable:$true] %s25_s25 }
   0x3   :  { %p535_p1 = scmp.lt.u32.totalorder %s531_s28, %s703_s3 }
   0x5   :  { %p537_p2 = pnand %p535_p1, %p532_p0 }
   0x7   :  { %540 = shalt.err (!%p537_p2)
}
   0x8   :  { %s541_s10 = scalar_lea.vmem %s26_s25, 1024  ;;  %p546_p4 = scmp.lt.s32.totalorder %s26_s25, %s26_s25 }
   0x9   :  { %p542_p3 = scmp.ne.s32.totalorder %s26_s25, %s541_s10  ;;  %p547_p5 = scmp.lt.s32.totalorder %s541_s10, %s541_s10 }
   0xb   :  { %p548_p6 = por %p547_p5, %p546_p4 }
   0xd   :  { %p549_p7 = pnand %p548_p6, %p542_p3 }
   0xf   :  { %552 = shalt.err (!%p549_p7)
}
  0x10   :  { %s580_s11 = smov 64   ;;  %s581_s12 = smov 4  }
  0x11   :  { %31 = dma.hbm_to_vmem [thread:$0]  %s703_s3, 1024, %s26_s25, [#allocation3], %s580_s11, %s580_s11, %s581_s12  }
  0x12   :  { %s582_s15 = smov [#allocation4]   ;;  %s553_s19 = scalar_lea.hbm %s705_s5, 1024 }
  0x13   :  { %s39_s16 = sshll.u32 %s582_s15, 4  ;;  %p554_p8 = scmp.ne.s32.totalorder %s705_s5, %s553_s19  ;;  %s40_s16 = int_to_ptr.vmem [resolvable:$true] %s39_s16 }
  0x14   :  { %p557_p9 = scmp.lt.u32.totalorder %s553_s19, %s705_s5 }
  0x16   :  { %p559_p10 = pnand %p557_p9, %p554_p8 }
  0x18   :  { %562 = shalt.err (!%p559_p10)
}
  0x19   :  { %s563_s24 = scalar_lea.vmem %s40_s16, 1024  ;;  %p568_p12 = scmp.lt.s32.totalorder %s40_s16, %s40_s16 }
  0x1a   :  { %p564_p11 = scmp.ne.s32.totalorder %s40_s16, %s563_s24  ;;  %p569_p13 = scmp.lt.s32.totalorder %s563_s24, %s563_s24 }
  0x1c   :  { %p570_p0 = por %p569_p13, %p568_p12 }
  0x1e   :  { %p571_p1 = pnand %p570_p0, %p564_p11 }
  0x20   :  { %574 = shalt.err (!%p571_p1)
}
  0x21   :  { %45 = dma.hbm_to_vmem [thread:$0]  %s705_s5, 1024, %s40_s16, [#allocation5], %s580_s11, %s580_s11, %s581_s12  }
  0x22   :  { %575 = dma.done.wait [#allocation3], 1024  }
  0x23   :  { %576 = vsyncadd [#allocation3], 4294966272 }
  0x24   :  { %577 = dma.done.wait [#allocation5], 1024  }
  0x25   :  { %578 = vsyncadd [#allocation5], 4294966272  ;;  %v583_v0 = vmov 0.0   ;;  %vm584_vm0 = vmmov 0   ;;  %v505_v1 = vld [vmem:[%s701_s1] sm:$0xff]   ;;  %v506_v2 = vld [vmem:[%s701_s1 + $0x8] sm:$0xff]   ;;  %v360_v63 = vlaneseq }
  0x26   :  { %451 = vmatprep.subr.bf16.mxu0 %v583_v0  ;;  %455 = vmatprep.mubr.msk.bf16.mxu0 %vm584_vm0, %v583_v0  ;;  %v55_v3 = vld [vmem:[%s700_s0] sm:$0xff]  ;;  %v56_v4 = vld [vmem:[%s700_s0 + $0x8] sm:$0xff]  ;;  %vm81_vm1 = vcmask 261120   ;;  %v509_v8 = vld [vmem:[#allocation2 + $0x10] sm:$0xff]   ;;  %vm399_vm6 = vcmask 72704  }
  0x27   :  { %459 = vmatprep.subr.bf16.mxu1 %v583_v0  ;;  %475 = vmatprep.mubr.msk.bf16.mxu1 %vm584_vm0, %v583_v0  ;;  %v507_v5 = vld [vmem:[#allocation2] sm:$0xff]   ;;  %v57_v6 = vpack.c.bf16 %v56_v4, %v55_v3  ;;  %v508_v7 = vld [vmem:[#allocation2 + $0x8] sm:$0xff]   ;;  %v510_v9 = vld [vmem:[#allocation2 + $0x18] sm:$0xff]  }
  0x28   :  { %452 = vmatpush3.bf16.msra.mxu0 %v505_v1  ;;  %460 = vmatpush3.bf16.msra.mxu1 %v507_v5  ;;  %v511_v10 = vld [vmem:[#allocation2 + $0x20] sm:$0xff]   ;;  %v512_v11 = vld [vmem:[#allocation2 + $0x28] sm:$0xff]   ;;  %v513_v12 = vld [vmem:[#allocation2 + $0x30] sm:$0xff]  }
  0x29   :  { %453 = vmatprep.subr.bf16.mxu0 %v583_v0  ;;  %461 = vmatprep.subr.bf16.mxu1 %v583_v0  ;;  %v514_v13 = vld [vmem:[#allocation2 + $0x38] sm:$0xff]   ;;  %v515_v14 = vld [vmem:[#allocation4] sm:$0xff]   ;;  %v516_v15 = vld [vmem:[#allocation4 + $0x8] sm:$0xff]  }
  0x2a   :  { %v517_v16 = vld [vmem:[#allocation4 + $0x10] sm:$0xff]   ;;  %v518_v17 = vld [vmem:[#allocation4 + $0x18] sm:$0xff]   ;;  %v519_v18 = vld [vmem:[#allocation4 + $0x20] sm:$0xff]  }
  0x2b   :  { %v408_v19 = vld [vmem:[%s702_s2] ss:$0 sm:$0xff]  ;;  %v520_v31 = vld [vmem:[#allocation4 + $0x28] sm:$0xff]   ;;  %v521_v32 = vld [vmem:[#allocation4 + $0x30] sm:$0xff]  }
  0x2c   :  { %454 = vmatpush3.bf16.msra.mxu0 %v506_v2  ;;  %462 = vmatpush3.bf16.msra.mxu1 %v508_v7  ;;  %v522_v33 = vld [vmem:[#allocation4 + $0x38] sm:$0xff]   ;;  %v412_v34 = vld [vmem:[%s704_s4] ss:$0 sm:$0xff]  ;;  %v361_v2 = vand.u32 127, %v360_v63 }
  0x2d   :  { %479 = vmatprep.subr.bf16.mxu0 %v583_v0  ;;  %463 = vmatprep.subr.bf16.mxu1 %v583_v0  ;;  %v421_v46 = vld [vmem:[%s706_s6] ss:$0 sm:$0xff] }
  0x2e   :  { %vm362_vm2 = vcmp.ge.s32.totalorder %v361_v2, 4  ;;  %vm363_vm3 = vcmp.lt.s32.totalorder %v361_v2, 8 }
  0x2f   :  { %456 = vmatmul.mubr.msk.bf16.vlgmr.msra.gmra.mrb[0].mxu0 %vm81_vm1, %v57_v6  ;;  %vm364_vm5 = vmand %vm362_vm2, %vm363_vm3 }
  0x30   :  { %495 = vmatprep.mubr.msk.bf16.mxu0 %vm584_vm0, %v583_v0  ;;  %464 = vmatpush3.bf16.msra.mxu1 %v509_v8 }
  0x31   :  { %465 = vmatprep.subr.bf16.mxu1 %v583_v0  ;;  %480 = vmatpush3.bf16.msra.mxu0 %v515_v14 }
  0x32   :  { %481 = vmatprep.subr.bf16.mxu0 %v583_v0 }
  0x34   :  { %466 = vmatpush3.bf16.msra.mxu1 %v510_v9 }
  0x35   :  { %467 = vmatprep.subr.bf16.mxu1 %v583_v0  ;;  %482 = vmatpush3.bf16.msra.mxu0 %v516_v15 }
  0x36   :  { %483 = vmatprep.subr.bf16.mxu0 %v583_v0 }
  0x38   :  { %468 = vmatpush3.bf16.msra.mxu1 %v511_v10 }
  0x39   :  { %469 = vmatprep.subr.bf16.mxu1 %v583_v0  ;;  %484 = vmatpush3.bf16.msra.mxu0 %v517_v16 }
  0x3a   :  { %485 = vmatprep.subr.bf16.mxu0 %v583_v0 }
  0x3c   :  { %470 = vmatpush3.bf16.msra.mxu1 %v512_v11 }
  0x3d   :  { %471 = vmatprep.subr.bf16.mxu1 %v583_v0  ;;  %486 = vmatpush3.bf16.msra.mxu0 %v518_v17 }
  0x3e   :  { %487 = vmatprep.subr.bf16.mxu0 %v583_v0 }
  0x40   :  { %472 = vmatpush3.bf16.msra.mxu1 %v513_v12 }
  0x41   :  { %473 = vmatprep.subr.bf16.mxu1 %v583_v0  ;;  %488 = vmatpush3.bf16.msra.mxu0 %v519_v18 }
  0x42   :  { %489 = vmatprep.subr.bf16.mxu0 %v583_v0 }
  0x44   :  { %474 = vmatpush3.bf16.msra.mxu1 %v514_v13 }
  0x45   :  { %490 = vmatpush3.bf16.msra.mxu0 %v520_v31 }
  0x46   :  { %491 = vmatprep.subr.bf16.mxu0 %v583_v0 }
  0x49   :  { %492 = vmatpush3.bf16.msra.mxu0 %v521_v32 }
  0x4a   :  { %493 = vmatprep.subr.bf16.mxu0 %v583_v0 }
  0x4d   :  { %494 = vmatpush3.bf16.msra.mxu0 %v522_v33 }
 0x102   :  { %v119_v20 = vpop.f32.mrb[0].mxu0 }
 0x103   :  { %v120_v21 = vadd.f32 %v408_v19, %v119_v20  ;;  %v457_v22 = vpop.f32.mrb[1].mxu0 }
 0x104   :  { %v122_v23 = vpop.f32.mrb[2].mxu0 }
 0x105   :  { %v126_v24 = vmul.f32 0.01, %v120_v21  ;;  %v123_v25 = vadd.f32 %v408_v19, %v122_v23  ;;  %v458_v26 = vpop.f32.mrb[3].mxu0 }
 0x107   :  { %v127_v27 = vmul.f32 0.01, %v123_v25  ;;  %v128_v28 = vmax.f32 %v120_v21, %v126_v24 }
 0x109   :  { %v129_v29 = vmax.f32 %v123_v25, %v127_v27 }
 0x10b   :  { %v130_v30 = vpack.c.bf16 %v129_v29, %v128_v28 }
 0x10d   :  { %476 = vmatmul.mubr.bf16.vlgmr.msra.gmra.mrb[0].mxu1 %v130_v30 }
 0x1e0   :  { %v236_v35 = vpop.f32.mrb[0].mxu1 }
 0x1e1   :  { %v237_v36 = vadd.f32 %v412_v34, %v236_v35  ;;  %v477_v37 = vpop.f32.mrb[1].mxu1 }
 0x1e2   :  { %v239_v38 = vpop.f32.mrb[2].mxu1 }
 0x1e3   :  { %v243_v39 = vmul.f32 0.01, %v237_v36  ;;  %v240_v40 = vadd.f32 %v412_v34, %v239_v38  ;;  %v478_v41 = vpop.f32.mrb[3].mxu1 }
 0x1e5   :  { %v244_v42 = vmul.f32 0.01, %v240_v40  ;;  %v245_v43 = vmax.f32 %v237_v36, %v243_v39 }
 0x1e7   :  { %v246_v44 = vmax.f32 %v240_v40, %v244_v42 }
 0x1e9   :  { %v247_v45 = vpack.c.bf16 %v246_v44, %v245_v43 }
 0x1eb   :  { %496 = vmatmul.mubr.bf16.vlgmr.msra.gmra.mrb[4].mxu0 %v247_v45 }
 0x2be   :  { %v353_v47 = vpop.f32.mrb[4].mxu0 }
 0x2bf   :  { %v354_v48 = vadd.f32 %v421_v46, %v353_v47  ;;  %v497_v49 = vpop.f32.mrb[5].mxu0 }
 0x2c0   :  { %v356_v50 = vpop.f32.mrb[6].mxu0 }
 0x2c1   :  { %v367_v51 = vand.u32 2147483647, %v354_v48  ;;  %v357_v52 = vadd.f32 %v421_v46, %v356_v50  ;;  %v498_v53 = vpop.f32.mrb[7].mxu0  ;;  %v365_v11 = vmax.f32 %v354_v48, 0.0 }
 0x2c3   :  { %v369_v54 = vsub.f32 0.0, %v367_v51  ;;  %v368_v55 = vand.u32 2147483647, %v357_v52  ;;  %v366_v16 = vmax.f32 %v357_v52, 0.0 }
 0x2c5   :  { %v371_v56 = vmul.f32 1.442695, %v369_v54  ;;  %v370_v57 = vsub.f32 0.0, %v368_v55 }
 0x2c7   :  { %523 = vpow2.f32 %v371_v56  ;;  %v373_v58 = vmul.f32 1.442695, %v370_v57 }
 0x2c9   :  { %525 = vpow2.f32 %v373_v58 }
 0x2d1   :  { %v524_v59 = vpop.eup %523 }
 0x2d2   :  { %v375_v60 = vadd.f32 1.0, %v524_v59  ;;  %v378_v0 = vmul.f32 -0.5, %v524_v59  ;;  %v381_v4 = vand.u32 2147483647, %v524_v59 }
 0x2d3   :  { %v526_v61 = vpop.eup %525 }
 0x2d4   :  { %527 = vlog2.f32 %v375_v60  ;;  %v384_v62 = vadd.f32 1.0, %v526_v61  ;;  %v387_v1 = vmul.f32 -0.5, %v526_v61  ;;  %v379_v3 = vadd.f32 1.0, %v378_v0 }
 0x2d5   :  { %v390_v7 = vand.u32 2147483647, %v526_v61  ;;  %vm382_vm4 = vcmp.lt.f32.partialorder %v381_v4, 0.0004427343 }
 0x2d6   :  { %529 = vlog2.f32 %v384_v62  ;;  %v388_v5 = vadd.f32 1.0, %v387_v1  ;;  %v380_v9 = vmul.f32 %v524_v59, %v379_v3 }
 0x2d7   :  { %vm391_vm7 = vcmp.lt.f32.partialorder %v390_v7, 0.0004427343 }
 0x2d8   :  { %v389_v14 = vmul.f32 %v526_v61, %v388_v5 }
 0x2de   :  { %v528_v6 = vpop.eup %527 }
 0x2df   :  { %v377_v8 = vmul.f32 0.6931472, %v528_v6 }
 0x2e0   :  { %v530_v10 = vpop.eup %529 }
 0x2e1   :  { %v383_v12 = vsel %vm382_vm4, %v380_v9, %v377_v8  ;;  %v386_v13 = vmul.f32 0.6931472, %v530_v10 }
 0x2e2   :  { %v393_v15 = vadd.f32 %v383_v12, %v365_v11 }
 0x2e3   :  { %v392_v17 = vsel %vm391_vm7, %v389_v14, %v386_v13 }
 0x2e4   :  { %v397_v18 = vsel %vm364_vm5, %v393_v15, %v354_v48  ;;  %v394_v19 = vadd.f32 %v392_v17, %v366_v16 }
 0x2e5   :  { %400 = vst.msk [vmem:[%s707_s7] sm:$0xff] %vm399_vm6, %v397_v18 }
 0x2e6   :  { %v398_v20 = vsel %vm364_vm5, %v394_v19, %v357_v52 }
 0x2e7   :  { %401 = vst.msk [vmem:[%s707_s7 + $0x8] sm:$0xff] %vm399_vm6, %v398_v20 }
 0x2e8   :  { %406 = vsyncpa [#allocation3], 1 }
 0x2e9   :  { %407 = vsyncpa [#allocation5], 1 }

</bundles_post_ra>
